<compile_context>
chip_gen: v6e
topology: v6e:2x2x1
jax: 0.10.0
libtpu: 0.0.40
codegen_flags: <defaults>
</compile_context>

<pallas_src>
import functools
import math

import jax
import jax.numpy as jnp
from jax.experimental import pallas as pl
from jax.experimental.pallas import tpu as pltpu

# Safe on every generation: above the 16/32 MiB default scoped limits
# (v5e/v6e/v7x), below v7x's 64 MiB physical VMEM.
_VMEM_LIMIT_BYTES = 48 * 1024 * 1024


# ---------------------------------------------------------------------------
# Tiling helper
# ---------------------------------------------------------------------------

def _pick_tile(dim, target, align):
    """Largest multiple of `align` that divides `dim` and is <= target.

    Falls back to the full dimension (always a legal block) if `dim` already
    fits in `target` or no aligned divisor exists.
    """
    if dim <= target:
        return dim
    start = (target // align) * align
    for cand in range(start, align - 1, -align):
        if dim % cand == 0:
            return cand
    return dim


# ---------------------------------------------------------------------------
# K-tiled linear kernel:  y = x @ w + b   (w pre-transposed to (d_in, d_out),
# stored bf16; x cast to bf16 in-kernel; fp32 accumulator scratch).
# ---------------------------------------------------------------------------

def _linear_kernel(x_ref, w_ref, b_ref, o_ref, acc_ref):
    @pl.when(pl.program_id(2) == 0)
    def _():
        acc_ref[...] = jnp.zeros_like(acc_ref)

    acc_ref[...] += jnp.dot(x_ref[...].astype(jnp.bfloat16), w_ref[...],
                            preferred_element_type=jnp.float32)

    @pl.when(pl.program_id(2) == pl.num_programs(2) - 1)
    def _():
        o_ref[...] = (acc_ref[...] + b_ref[...]).astype(o_ref.dtype)


def linear_pallas(x, wt_bf16, b2, *, row_block=512, col_block=512, k_block=512,
                  vmem_limit_bytes=_VMEM_LIMIT_BYTES):
    """y = x @ wt + b2.  x: (N, d_in) f32, wt: (d_in, d_out) bf16, b2: (1, d_out) f32."""
    n, d_in = x.shape
    d_out = wt_bf16.shape[1]
    # Large row blocks keep the number of full-weight re-reads (n // tm) small;
    # K-tiling bounds the per-step VMEM working set.
    tm = _pick_tile(n, row_block, 8)
    tn = _pick_tile(d_out, col_block, 128)
    tk = _pick_tile(d_in, k_block, 128)
    grid = (n // tm, d_out // tn, d_in // tk)

    return pl.pallas_call(
        _linear_kernel,
        out_shape=jax.ShapeDtypeStruct((n, d_out), x.dtype),
        grid_spec=pltpu.PrefetchScalarGridSpec(
            num_scalar_prefetch=0,
            grid=grid,
            in_specs=[
                pl.BlockSpec((tm, tk), lambda i, j, kk: (i, kk)),
                pl.BlockSpec((tk, tn), lambda i, j, kk: (kk, j)),
                pl.BlockSpec((1, tn), lambda i, j, kk: (0, j)),
            ],
            out_specs=pl.BlockSpec((tm, tn), lambda i, j, kk: (i, j)),
            scratch_shapes=[pltpu.VMEM((tm, tn), jnp.float32)],
        ),
        compiler_params=pltpu.CompilerParams(
            dimension_semantics=("parallel", "parallel", "arbitrary"),
            vmem_limit_bytes=vmem_limit_bytes),
    )(x, wt_bf16, b2)


# ---------------------------------------------------------------------------
# Flash-style attention on head-merged activations.
#   inputs : q/k/v tiles (1, t, d_model) carved out of (B, S, C) arrays
#   output : (B, Sq, d_model) with heads already merged (lane-dense store)
# ---------------------------------------------------------------------------

def _flash_attn_kernel(*refs, nhead, d_k, masked):
    if masked:
        q_ref, k_ref, v_ref, bias_ref, o_ref, m_ref, l_ref, acc_ref = refs
    else:
        q_ref, k_ref, v_ref, o_ref, m_ref, l_ref, acc_ref = refs
        bias_ref = None

    kv = pl.program_id(2)

    @pl.when(kv == 0)
    def _():
        m_ref[...] = jnp.full_like(m_ref, -jnp.inf)
        l_ref[...] = jnp.zeros_like(l_ref)
        acc_ref[...] = jnp.zeros_like(acc_ref)

    q = q_ref[0]            # (tq, d_model) f32, head-merged (Q pre-scaled)
    k = k_ref[0]            # (tk, d_model)
    v = v_ref[0]            # (tk, d_model)
    bias = bias_ref[0].astype(jnp.float32) if masked else None   # (tq, tk)

    # Unrolled over heads: static lane slices of the head-merged tiles keep
    # everything a plain 2-D MXU matmul (no in-kernel transposes / reshapes).
    for h in range(nhead):
        cols = slice(h * d_k, (h + 1) * d_k)
        qh = q[:, cols].astype(jnp.bfloat16)          # (tq, d_k)
        kh = k[:, cols].astype(jnp.bfloat16)          # (tk, d_k)
        vh = v[:, cols].astype(jnp.bfloat16)          # (tk, d_k)

        # 1/sqrt(d_k) already folded into the Q projection weights.
        s = jnp.einsum("qd,kd->qk", qh, kh,
                       preferred_element_type=jnp.float32)        # (tq, tk)
        if masked:
            s = s + bias        # additive bias: 0 keep / -1e9 drop

        hcol = slice(h, h + 1)
        m_prev = m_ref[:, hcol]                                   # (tq, 1)
        m_new = jnp.maximum(m_prev, s.max(axis=-1, keepdims=True))
        alpha = jnp.exp(m_prev - m_new)
        p = jnp.exp(s - m_new)                                    # (tq, tk) f32
        l_ref[:, hcol] = alpha * l_ref[:, hcol] + p.sum(axis=-1, keepdims=True)
        m_ref[:, hcol] = m_new

        pv = jnp.dot(p.astype(jnp.bfloat16), vh,
                     preferred_element_type=jnp.float32)          # (tq, d_k)
        acc_ref[:, cols] = alpha * acc_ref[:, cols] + pv

    @pl.when(kv == pl.num_programs(2) - 1)
    def _():
        # Exact reciprocal: runs once per q block, negligible cost, keeps the
        # output close to the fp32 reference.
        for h in range(nhead):
            cols = slice(h * d_k, (h + 1) * d_k)
            acc_ref[:, cols] = acc_ref[:, cols] / l_ref[:, h:h + 1]
        o_ref[0] = acc_ref[...].astype(o_ref.dtype)   # lane-dense d_model-wide store


def flash_attention_pallas(q, k, v, mask=None, *, nhead, d_model,
                           q_col=0, k_col=0, v_col=0,
                           q_block=256, kv_block=512,
                           vmem_limit_bytes=_VMEM_LIMIT_BYTES):
    """Flash attention over head-merged activations.

    q: (B, Sq, Cq), k/v: (B, Sk, Ck).  The d_model-wide column block number
    {q,k,v}_col of each array holds that operand, so the kernel can read
    Q/K/V directly out of a fused (B, S, 3*d_model) QKV projection with zero
    copies.  mask: optional (B, Sq, Sk), 1 = keep / 0 = mask out.
    Returns (B, Sq, d_model) with heads already merged.  The S x S probability
    matrix never touches HBM.
    """
    B, Sq, _ = q.shape
    Sk = k.shape[1]
    d_k = d_model // nhead
    masked = mask is not None

    bias = None
    if masked:
        # Additive bias in bf16 (halves mask traffic vs f32 where/select path).
        # NOTE: for fully-masked rows this yields softmax(scores) instead of the
        # reference's uniform row; both are degenerate.
        bias = ((mask.astype(jnp.float32) - 1.0) * 1e9).astype(jnp.bfloat16)

    # KV tile: the bias block's lane dim must be a multiple of 128 (or full Sk).
    tk = _pick_tile(Sk, kv_block, 128 if masked else 16)
    if tk > kv_block:
        # No usable divisor: pad Sk up to a multiple of 128 (padded keys masked
        # out by the bias) instead of loading the whole sequence per step.
        pad = (-Sk) % 128
        k = jnp.pad(k, ((0, 0), (0, pad), (0, 0)))
        v = jnp.pad(v, ((0, 0), (0, pad), (0, 0)))
        if bias is None:
            bias = jnp.zeros((B, Sq, Sk), jnp.bfloat16)
        bias = jnp.pad(bias, ((0, 0), (0, 0), (0, pad)), constant_values=-1e9)
        masked = True
        Sk = k.shape[1]
        tk = _pick_tile(Sk, kv_block, 128)

    # Q tile: keep >= 2 q blocks when B == 1 so both v7x TensorCores get work.
    q_target = q_block
    if B == 1 and Sq >= 32:
        q_target = min(q_block, Sq // 2)
    tq = _pick_tile(Sq, q_target, 16)

    grid = (B, Sq // tq, Sk // tk)
    kernel = functools.partial(_flash_attn_kernel,
                               nhead=nhead, d_k=d_k, masked=masked)

    in_specs = [
        pl.BlockSpec((1, tq, d_model), lambda b, qi, ki: (b, qi, q_col)),
        pl.BlockSpec((1, tk, d_model), lambda b, qi, ki: (b, ki, k_col)),
        pl.BlockSpec((1, tk, d_model), lambda b, qi, ki: (b, ki, v_col)),
    ]
    args = [q, k, v]
    if masked:
        in_specs.append(pl.BlockSpec((1, tq, tk), lambda b, qi, ki: (b, qi, ki)))
        args.append(bias)

    grid_spec = pltpu.PrefetchScalarGridSpec(
        num_scalar_prefetch=0,
        grid=grid,
        in_specs=in_specs,
        out_specs=pl.BlockSpec((1, tq, d_model), lambda b, qi, ki: (b, qi, 0)),
        scratch_shapes=[
            pltpu.VMEM((tq, nhead), jnp.float32),    # running max m (per head)
            pltpu.VMEM((tq, nhead), jnp.float32),    # running denom l
            pltpu.VMEM((tq, d_model), jnp.float32),  # head-merged accumulator
        ],
    )

    return pl.pallas_call(
        kernel,
        out_shape=jax.ShapeDtypeStruct((B, Sq, d_model), q.dtype),
        grid_spec=grid_spec,
        compiler_params=pltpu.CompilerParams(
            dimension_semantics=("parallel", "parallel", "arbitrary"),
            vmem_limit_bytes=vmem_limit_bytes),
    )(*args)


# ---------------------------------------------------------------------------
# Parameters (PyTorch nn.Linear convention) + one-time prep
# ---------------------------------------------------------------------------

def init_mha_params(key, d_model):
    """4 nn.Linear(d_model, d_model) layers, PyTorch default uniform init."""
    bound = 1.0 / math.sqrt(d_model)
    keys = jax.random.split(key, 8)
    params = []
    for i in range(4):
        w = jax.random.uniform(keys[2 * i], (d_model, d_model),
                               jnp.float32, -bound, bound)
        b = jax.random.uniform(keys[2 * i + 1], (d_model,),
                               jnp.float32, -bound, bound)
        params.append((w, b))
    return params


def prepare_mha_params(params, nhead):
    """Transpose weights to (d_in, d_out), fold 1/sqrt(d_k) into Q, fuse QKV,
    and cast weights to bf16 (MXU-native).  Biases stay f32."""
    (wq, bq), (wk, bk), (wv, bv), (wo, bo) = params
    d_model = wq.shape[0]
    d_k = d_model // nhead
    scale = 1.0 / math.sqrt(d_k)
    wq_s, bq_s = wq * scale, bq * scale

    def wt(w):
        return w.T.astype(jnp.bfloat16)

    return {
        "w_qkv_t": jnp.concatenate([wq_s.T, wk.T, wv.T],
                                   axis=1).astype(jnp.bfloat16),   # (d, 3d)
        "b_qkv": jnp.concatenate([bq_s, bk, bv]).reshape(1, -1),
        "w_q_t": wt(wq_s), "b_q": bq_s.reshape(1, -1),
        "w_k_t": wt(wk), "b_k": bk.reshape(1, -1),
        "w_v_t": wt(wv), "b_v": bv.reshape(1, -1),
        "w_o_t": wt(wo), "b_o": bo.reshape(1, -1),
    }


# ---------------------------------------------------------------------------
# MultiHeadAttention forward (Pallas-backed)
# ---------------------------------------------------------------------------

def multi_head_attention_forward(prep, nhead, query, key, value, mask=None):
    """query: (B, Sq, d_model), key/value: (B, Sk, d_model).
    mask: optional (B, Sq, Sk), 1 = keep / 0 = mask (PyTorch masked_fill(mask==0)).
    Returns (B, Sq, d_model)."""
    B, Sq, d_model = query.shape
    Sk = key.shape[1]

    if (query is key) and (key is value):
        # Self-attention: fused QKV projection (activation read from HBM once;
        # Q pre-scaled by 1/sqrt(d_k) through the folded weights).
        qkv = linear_pallas(query.reshape(B * Sq, d_model),
                            prep["w_qkv_t"], prep["b_qkv"])
        qkv = qkv.reshape(B, Sq, 3 * d_model)
        if d_model % 128 == 0:
            # Zero-copy: attention reads Q/K/V straight out of the fused
            # projection via column-block offsets in its index maps.
            x = flash_attention_pallas(qkv, qkv, qkv, mask,
                                       nhead=nhead, d_model=d_model,
                                       q_col=0, k_col=1, v_col=2)
        else:
            # d_model not lane-aligned: fall back to XLA column slices.
            q3 = qkv[..., 0 * d_model:1 * d_model]
            k3 = qkv[..., 1 * d_model:2 * d_model]
            v3 = qkv[..., 2 * d_model:3 * d_model]
            x = flash_attention_pallas(q3, k3, v3, mask,
                                       nhead=nhead, d_model=d_model)
    else:
        q3 = linear_pallas(query.reshape(B * Sq, d_model),
                           prep["w_q_t"], prep["b_q"]).reshape(B, Sq, d_model)
        k3 = linear_pallas(key.reshape(B * Sk, d_model),
                           prep["w_k_t"], prep["b_k"]).reshape(B, Sk, d_model)
        v3 = linear_pallas(value.reshape(B * Sk, d_model),
                           prep["w_v_t"], prep["b_v"]).reshape(B, Sk, d_model)
        x = flash_attention_pallas(q3, k3, v3, mask,
                                   nhead=nhead, d_model=d_model)

    # Heads already merged by the attention kernel; only the output projection
    # remains (no XLA transposes anywhere in the path).
    out = linear_pallas(x.reshape(B * Sq, d_model), prep["w_o_t"], prep["b_o"])
    return out.reshape(B, Sq, d_model)


# ---------------------------------------------------------------------------
# Pure-JAX fp32 reference for correctness checking
# ---------------------------------------------------------------------------

def reference_forward(params, nhead, query, key, value, mask=None):
    B, Sq, d_model = query.shape
    d_k = d_model // nhead

    def lin(x, w, b):
        return x @ w.T + b

    def split(x):
        return x.reshape(x.shape[0], -1, nhead, d_k).transpose(0, 2, 1, 3)

    q = split(lin(query, *params[0]))
    k = split(lin(key, *params[1]))
    v = split(lin(value, *params[2]))

    scores = jnp.einsum("bhqd,bhkd->bhqk", q, k) / math.sqrt(d_k)
    if mask is not None:
        scores = jnp.where(mask[:, None] == 0, -1e9, scores)
    p = jax.nn.softmax(scores, axis=-1)
    x = jnp.einsum("bhqk,bhkd->bhqd", p, v)
    x = x.transpose(0, 2, 1, 3).reshape(B, Sq, d_model)
    return lin(x, *params[3])


# ---------------------------------------------------------------------------
# Main
# ---------------------------------------------------------------------------

if __name__ == "__main__":
    B, S, nhead = 2, 8, 4
    root = jax.random.PRNGKey(0)
    kp, kq, kk, kv, kp2, kx2 = jax.random.split(root, 6)

    # Kernel uses bf16 MXU compute with fp32 accumulation; reference is fp32.
    ATOL = RTOL = 3e-2

    # --- config 1: d_model = 128 (lane-aligned -> zero-copy fused QKV path) ---
    d_model = 128
    params = init_mha_params(kp, d_model)
    prep = prepare_mha_params(params, nhead)

    # 1a) Self-attention, no mask.
    x_self = jax.random.normal(kq, (B, S, d_model), jnp.float32)
    out1 = jax.block_until_ready(
        multi_head_attention_forward(prep, nhead, x_self, x_self, x_self))
    ref1 = reference_forward(params, nhead, x_self, x_self, x_self)
    assert out1.shape == (B, S, d_model)
    assert jnp.allclose(out1, ref1, atol=ATOL, rtol=RTOL), (
        f"self-attn max err {float(jnp.max(jnp.abs(out1 - ref1)))}")

    # 1b) Distinct q/k/v with a causal mask.
    query = jax.random.normal(kq, (B, S, d_model), jnp.float32)
    key_in = jax.random.normal(kk, (B, S, d_model), jnp.float32)
    value = jax.random.normal(kv, (B, S, d_model), jnp.float32)
    mask = jnp.broadcast_to(jnp.tril(jnp.ones((S, S), jnp.float32)), (B, S, S))
    out2 = jax.block_until_ready(
        multi_head_attention_forward(prep, nhead, query, key_in, value, mask=mask))
    ref2 = reference_forward(params, nhead, query, key_in, value, mask=mask)
    assert out2.shape == (B, S, d_model)
    assert jnp.allclose(out2, ref2, atol=ATOL, rtol=RTOL), (
        f"masked max err {float(jnp.max(jnp.abs(out2 - ref2)))}")

    # --- config 2: d_model = 32 (not lane-aligned -> fused QKV + slice fallback) ---
    d_model2 = 32
    params2 = init_mha_params(kp2, d_model2)
    prep2 = prepare_mha_params(params2, nhead)
    x2 = jax.random.normal(kx2, (B, S, d_model2), jnp.float32)
    mask2 = jnp.broadcast_to(jnp.tril(jnp.ones((S, S), jnp.float32)), (B, S, S))
    out3 = jax.block_until_ready(
        multi_head_attention_forward(prep2, nhead, x2, x2, x2, mask=mask2))
    ref3 = reference_forward(params2, nhead, x2, x2, x2, mask=mask2)
    assert out3.shape == (B, S, d_model2)
    assert jnp.allclose(out3, ref3, atol=ATOL, rtol=RTOL), (
        f"small-d_model max err {float(jnp.max(jnp.abs(out3 - ref3)))}")

    print("KERNEL_OK")
</pallas_src>

<mosaic_0001>
module attributes {stable_mosaic.version = 11 : i64} {
  func.func @_linear_kernel(%arg0: i32, %arg1: i32, %arg2: i32, %arg3: memref<16x128xf32, #tpu.memory_space<vmem>>, %arg4: memref<128x384xbf16, #tpu.memory_space<vmem>>, %arg5: memref<1x384xf32, #tpu.memory_space<vmem>>, %arg6: memref<16x384xf32, #tpu.memory_space<vmem>>, %arg7: memref<16x384xf32, #tpu.memory_space<vmem>>) attributes {dimension_semantics = [#tpu.dimension_semantics<parallel>, #tpu.dimension_semantics<parallel>, #tpu.dimension_semantics<arbitrary>], iteration_bounds = array<i64: 1, 1, 1>, scalar_prefetch = 0 : i64, scratch_operands = 1 : i64, tpu.core_type = #tpu.core_type<tc>, window_params = [{transform_indices = @transform_0, window_bounds = array<i64: 16, 128>}, {transform_indices = @transform_1, window_bounds = array<i64: 128, 384>}, {transform_indices = @transform_2, window_bounds = array<i64: 1, 384>}, {transform_indices = @transform_3, window_bounds = array<i64: 16, 384>}]} {
    %c0_i32 = arith.constant 0 : i32
    %0 = arith.cmpi eq, %arg2, %c0_i32 : i32
    %1 = arith.extui %0 : i1 to i32
    %c0_i32_0 = arith.constant 0 : i32
    %2 = arith.cmpi ne, %1, %c0_i32_0 : i32
    scf.if %2 {
      %cst_10 = arith.constant 0.000000e+00 : f32
      %13 = vector.broadcast %cst_10 : f32 to vector<16x384xf32>
      %c0_11 = arith.constant 0 : index
      %c0_12 = arith.constant 0 : index
      %14 = vector.load %arg7[%c0_11, %c0_12] : memref<16x384xf32, #tpu.memory_space<vmem>>, vector<16x384xf32>
      tpu.vector_store %arg7[%c0_11, %c0_12], %13 {strides = array<i32>} : memref<16x384xf32, #tpu.memory_space<vmem>>, vector<16x384xf32>,
    } else {
    }
    %c0 = arith.constant 0 : index
    %c0_1 = arith.constant 0 : index
    %3 = vector.load %arg7[%c0, %c0_1] : memref<16x384xf32, #tpu.memory_space<vmem>>, vector<16x384xf32>
    %c0_2 = arith.constant 0 : index
    %c0_3 = arith.constant 0 : index
    %4 = vector.load %arg3[%c0_2, %c0_3] : memref<16x128xf32, #tpu.memory_space<vmem>>, vector<16x128xf32>
    %5 = arith.truncf %4 : vector<16x128xf32> to vector<16x128xbf16>
    %c0_4 = arith.constant 0 : index
    %c0_5 = arith.constant 0 : index
    %6 = vector.load %arg4[%c0_4, %c0_5] : memref<128x384xbf16, #tpu.memory_space<vmem>>, vector<128x384xbf16>
    %cst = arith.constant dense<0.000000e+00> : vector<16x384xf32>
    %7 = tpu.matmul %5, %6, %cst {dimension_numbers = #tpu.dot_dimension_numbers<[1], [0], [0], [1], [0, 0, 1, 1], [], []>} : vector<16x128xbf16>, vector<128x384xbf16>, vector<16x384xf32> -> vector<16x384xf32>
    %8 = arith.addf %3, %7 : vector<16x384xf32>
    %c0_6 = arith.constant 0 : index
    %c0_7 = arith.constant 0 : index
    %9 = vector.load %arg7[%c0_6, %c0_7] : memref<16x384xf32, #tpu.memory_space<vmem>>, vector<16x384xf32>
    tpu.vector_store %arg7[%c0_6, %c0_7], %8 {strides = array<i32>} : memref<16x384xf32, #tpu.memory_space<vmem>>, vector<16x384xf32>,
    %c0_i32_8 = arith.constant 0 : i32
    %10 = arith.cmpi eq, %arg2, %c0_i32_8 : i32
    %11 = arith.extui %10 : i1 to i32
    %c0_i32_9 = arith.constant 0 : i32
    %12 = arith.cmpi ne, %11, %c0_i32_9 : i32
    scf.if %12 {
      %c0_10 = arith.constant 0 : index
      %c0_11 = arith.constant 0 : index
      %13 = vector.load %arg7[%c0_10, %c0_11] : memref<16x384xf32, #tpu.memory_space<vmem>>, vector<16x384xf32>
      %c0_12 = arith.constant 0 : index
      %c0_13 = arith.constant 0 : index
      %14 = vector.load %arg5[%c0_12, %c0_13] : memref<1x384xf32, #tpu.memory_space<vmem>>, vector<1x384xf32>
      %15 = vector.broadcast %14 : vector<1x384xf32> to vector<16x384xf32>
      %16 = arith.addf %13, %15 : vector<16x384xf32>
      %c0_14 = arith.constant 0 : index
      %c0_15 = arith.constant 0 : index
      %17 = vector.load %arg6[%c0_14, %c0_15] : memref<16x384xf32, #tpu.memory_space<vmem>>, vector<16x384xf32>
      tpu.vector_store %arg6[%c0_14, %c0_15], %16 {strides = array<i32>} : memref<16x384xf32, #tpu.memory_space<vmem>>, vector<16x384xf32>,
    } else {
    }
    return
  }
  func.func @transform_0(%arg0: i32, %arg1: i32, %arg2: i32) -> (i32, i32) {
    %c0_i32 = arith.constant 0 : i32
    return %arg0, %arg2 : i32, i32
  }
  func.func @transform_1(%arg0: i32, %arg1: i32, %arg2: i32) -> (i32, i32) {
    %c0_i32 = arith.constant 0 : i32
    return %arg2, %arg1 : i32, i32
  }
  func.func @transform_2(%arg0: i32, %arg1: i32, %arg2: i32) -> (i32, i32) {
    %c0_i32 = arith.constant 0 : i32
    %c0_i32_0 = arith.constant 0 : i32
    return %c0_i32, %arg1 : i32, i32
  }
  func.func @transform_3(%arg0: i32, %arg1: i32, %arg2: i32) -> (i32, i32) {
    %c0_i32 = arith.constant 0 : i32
    return %arg0, %arg1 : i32, i32
  }
}

</mosaic_0001>

<bundles_post_ra>
// kernel: tpu_custom_call.1
= control target key start
LH: loop header
LB: loop body
LE: loop exit
PB: predicated region body
PF: predicated region fallthrough
CT: control target
= control target key end

     0   :  { %8 = vsyncpa [#allocation4], 0  ;;  %s582_s0 = inlined_call_operand.hbm [shape: f32[16,128], index: 0, kind: input, shape index: {}]   ;;  %s583_s1 = inlined_call_operand.hbm [shape: bf16[128,384], index: 1, kind: input, shape index: {}]   ;;  %s584_s2 = inlined_call_operand.vmem [shape: f32[1,384], index: 2, kind: input, shape index: {}]   ;;  %s585_s3 = inlined_call_operand.hbm [shape: f32[16,384], index: 3, kind: output, shape index: {}]  }
   0x1   :  { %9 = vsyncpa [#allocation7], 0 }
   0x2   :  { %10 = vsyncpa [#allocation5], 0  ;;  %s538_s12 = smov [#allocation3]  }
   0x3   :  { %s16_s13 = sshll.u32 %s538_s12, 4  ;;  %s17_s13 = int_to_ptr.vmem [resolvable:$true] %s16_s13 }
   0x4   :  { %s480_s14 = scalar_lea.vmem %s17_s13, 256  ;;  %p485_p1 = scmp.lt.s32.totalorder %s17_s13, %s17_s13 }
   0x5   :  { %p481_p0 = scmp.ne.s32.totalorder %s17_s13, %s480_s14  ;;  %p486_p2 = scmp.lt.s32.totalorder %s480_s14, %s480_s14 }
   0x7   :  { %p487_p3 = por %p486_p2, %p485_p1 }
   0x9   :  { %p488_p4 = pnand %p487_p3, %p481_p0 }
   0xb   :  { %491 = shalt.err (!%p488_p4)
}
   0xc   :  { %s539_s15 = smov 128   ;;  %s540_s16 = smov 8  }
   0xd   :  { %22 = dma.hbm_to_vmem [thread:$0]  %s582_s0, 256, %s17_s13, [#allocation4], %s539_s15, %s539_s15, %s540_s16  }
   0xe   :  { %s541_s19 = smov [#allocation6]  }
   0xf   :  { %s28_s20 = sshll.u32 %s541_s19, 4  ;;  %s29_s20 = int_to_ptr.vmem [resolvable:$true] %s28_s20 }
  0x10   :  { %s500_s21 = scalar_lea.vmem %s29_s20, 3072  ;;  %p505_p6 = scmp.lt.s32.totalorder %s29_s20, %s29_s20 }
  0x11   :  { %p501_p5 = scmp.ne.s32.totalorder %s29_s20, %s500_s21  ;;  %p506_p7 = scmp.lt.s32.totalorder %s500_s21, %s500_s21 }
  0x13   :  { %p507_p8 = por %p506_p7, %p505_p6 }
  0x15   :  { %p508_p9 = pnand %p507_p8, %p501_p5 }
  0x17   :  { %511 = shalt.err (!%p508_p9)
}
  0x18   :  { %s542_s22 = smov 192   ;;  %s543_s23 = smov 12  }
  0x19   :  { %34 = dma.hbm_to_vmem [thread:$0]  %s583_s1, 3072, %s29_s20, [#allocation7], %s542_s22, %s542_s22, %s543_s23  }
  0x1a   :  { %532 = dma.done.wait [#allocation4], 256  }
  0x1b   :  { %533 = vsyncadd [#allocation4], 4294967040 }
  0x1c   :  { %534 = dma.done.wait [#allocation7], 3072  }
  0x1d   :  { %535 = vsyncadd [#allocation7], 4294964224  ;;  %v544_v0 = vmov 0.0   ;;  %vm545_vm0 = vmmov 0   ;;  %v546_v1 = vmov 0   ;;  %v60_v25 = vld [vmem:[#allocation3] sm:$0xff]  ;;  %v330_v29 = vlaneseq }
  0x1e   :  { %408 = vmatprep.subr.bf16.mxu1 %v544_v0  ;;  %424 = vmatprep.mubr.msk.bf16.mxu1 %vm545_vm0, %v544_v0  ;;  %v440_v2 = vld [vmem:[#allocation6 + $0xac] ss:$12 sps:$4 sm:$0xff]   ;;  %v442_v3 = vld [vmem:[#allocation6 + $0xb0] ss:$12 sps:$4 sm:$0xff]   ;;  %v443_v4 = vld [vmem:[#allocation6 + $0xa8] ss:$12 sps:$4 sm:$0xff]  }
  0x1f   :  { %255 = vmatprep.mubr.bf16.mxu0 %v546_v1  ;;  %223 = vmatprep.subr.bf16.mxu0 %v440_v2  ;;  %v444_v5 = vld [vmem:[#allocation6 + $0x94] ss:$12 sps:$4 sm:$0xff]   ;;  %v446_v6 = vld [vmem:[#allocation6 + $0x98] ss:$12 sps:$4 sm:$0xff]   ;;  %v447_v7 = vld [vmem:[#allocation6 + $0x90] ss:$12 sps:$4 sm:$0xff]  }
  0x20   :  { %409 = vmatpush3.bf16.msra.mxu1 %v442_v3  ;;  %224 = vmatpush1.bf16.msra.mxu0 %v443_v4  ;;  %v448_v8 = vld [vmem:[#allocation6 + $0x7c] ss:$12 sps:$4 sm:$0xff]   ;;  %v450_v9 = vld [vmem:[#allocation6 + $0x80] ss:$12 sps:$4 sm:$0xff]   ;;  %v451_v10 = vld [vmem:[#allocation6 + $0x78] ss:$12 sps:$4 sm:$0xff]  }
  0x21   :  { %410 = vmatprep.subr.bf16.mxu1 %v544_v0  ;;  %225 = vmatprep.subr.bf16.mxu0 %v444_v5  ;;  %v452_v11 = vld [vmem:[#allocation6 + $0x64] ss:$12 sps:$4 sm:$0xff]   ;;  %v454_v12 = vld [vmem:[#allocation6 + $0x68] ss:$12 sps:$4 sm:$0xff]   ;;  %v455_v13 = vld [vmem:[#allocation6 + $0x60] ss:$12 sps:$4 sm:$0xff]  }
  0x22   :  { %v456_v14 = vld [vmem:[#allocation6 + $0x4c] ss:$12 sps:$4 sm:$0xff]   ;;  %v458_v15 = vld [vmem:[#allocation6 + $0x50] ss:$12 sps:$4 sm:$0xff]   ;;  %v459_v16 = vld [vmem:[#allocation6 + $0x48] ss:$12 sps:$4 sm:$0xff]  }
  0x23   :  { %v460_v17 = vld [vmem:[#allocation6 + $0x34] ss:$12 sps:$4 sm:$0xff]   ;;  %v462_v18 = vld [vmem:[#allocation6 + $0x38] ss:$12 sps:$4 sm:$0xff]   ;;  %v463_v19 = vld [vmem:[#allocation6 + $0x30] ss:$12 sps:$4 sm:$0xff]  }
  0x24   :  { %411 = vmatpush3.bf16.msra.mxu1 %v446_v6  ;;  %226 = vmatpush1.bf16.msra.mxu0 %v447_v7  ;;  %v464_v20 = vld [vmem:[#allocation6 + $0x1c] ss:$12 sps:$4 sm:$0xff]   ;;  %v466_v21 = vld [vmem:[#allocation6 + $0x20] ss:$12 sps:$4 sm:$0xff]   ;;  %v467_v22 = vld [vmem:[#allocation6 + $0x18] ss:$12 sps:$4 sm:$0xff]  }
  0x25   :  { %412 = vmatprep.subr.bf16.mxu1 %v544_v0  ;;  %227 = vmatprep.subr.bf16.mxu0 %v448_v8  ;;  %v468_v23 = vld [vmem:[#allocation6 + $0x4] ss:$12 sps:$4 sm:$0xff]   ;;  %v470_v24 = vld [vmem:[#allocation6 + $0x8] ss:$12 sps:$4 sm:$0xff]   ;;  %v61_v26 = vld [vmem:[#allocation3 + $0x8] sm:$0xff]  ;;  %v331_v30 = vshrl.u32 %v330_v29, 7 }
  0x26   :  { %v471_v27 = vld [vmem:[#allocation6] ss:$12 sps:$4 sm:$0xff]   ;;  %v62_v28 = vpack.c.bf16 %v61_v26, %v60_v25  ;;  %v328_v33 = vld [vmem:[%s584_s2] sm:$0x7]  ;;  %s547_s26 = smov [#allocation8]  }
  0x27   :  { %v340_v31 = vsub.s32 2, %v331_v30  ;;  %v332_v32 = vsub.s32 0, %v331_v30  ;;  %v336_v34 = vsub.s32 1, %v331_v30  ;;  %s362_s27 = sshll.u32 %s547_s26, 4  ;;  %s363_s27 = int_to_ptr.vmem [resolvable:$true] %s362_s27 }
  0x28   :  { %413 = vmatpush3.bf16.msra.mxu1 %v450_v9  ;;  %228 = vmatpush1.bf16.msra.mxu0 %v451_v10  ;;  %s512_s2 = scalar_lea.vmem %s363_s27, 768  ;;  %p517_p11 = scmp.lt.s32.totalorder %s363_s27, %s363_s27 }
  0x29   :  { %414 = vmatprep.subr.bf16.mxu1 %v544_v0  ;;  %229 = vmatprep.subr.bf16.mxu0 %v452_v11  ;;  %v341_v35 = vrot.slane %v328_v33, %v340_v31  ;;  %v333_v36 = vrot.slane %v328_v33, %v332_v32  ;;  %v337_v38 = vrot.slane %v328_v33, %v336_v34  ;;  %p513_p10 = scmp.ne.s32.totalorder %s363_s27, %s512_s2  ;;  %p518_p12 = scmp.lt.s32.totalorder %s512_s2, %s512_s2 }
  0x2b   :  { %p519_p13 = por %p518_p12, %p517_p11 }
  0x2c   :  { %415 = vmatpush3.bf16.msra.mxu1 %v454_v12  ;;  %230 = vmatpush1.bf16.msra.mxu0 %v455_v13 }
  0x2d   :  { %416 = vmatprep.subr.bf16.mxu1 %v544_v0  ;;  %231 = vmatprep.subr.bf16.mxu0 %v456_v14  ;;  %p520_p0 = pnand %p519_p13, %p513_p10 }
  0x30   :  { %417 = vmatpush3.bf16.msra.mxu1 %v458_v15  ;;  %232 = vmatpush1.bf16.msra.mxu0 %v459_v16 }
  0x31   :  { %418 = vmatprep.subr.bf16.mxu1 %v544_v0  ;;  %233 = vmatprep.subr.bf16.mxu0 %v460_v17 }
  0x34   :  { %419 = vmatpush3.bf16.msra.mxu1 %v462_v18  ;;  %234 = vmatpush1.bf16.msra.mxu0 %v463_v19 }
  0x35   :  { %420 = vmatprep.subr.bf16.mxu1 %v544_v0  ;;  %235 = vmatprep.subr.bf16.mxu0 %v464_v20 }
  0x38   :  { %421 = vmatpush3.bf16.msra.mxu1 %v466_v21  ;;  %236 = vmatpush1.bf16.msra.mxu0 %v467_v22 }
  0x39   :  { %422 = vmatprep.subr.bf16.mxu1 %v544_v0  ;;  %237 = vmatprep.subr.bf16.mxu0 %v468_v23 }
  0x3c   :  { %423 = vmatpush3.bf16.msra.mxu1 %v470_v24  ;;  %238 = vmatpush1.bf16.msra.mxu0 %v471_v27 }
  0x3f   :  { %425 = vmatmul.mubr.bf16.vlgmr.msra.gmra.mxu1 %v62_v28  ;;  %256 = vmatmul.mubr.bf16.vlgmr.msra.gmra.mxu0 %v62_v28 }
  0xff   :  { %v300_v37 = vpop.f32.mrf.mxu1  ;;  %v257_v40 = vpop.f32.mrf.mxu0 }
 0x100   :  { %v347_v39 = vadd.f32 %v341_v35, %v300_v37  ;;  %v345_v41 = vadd.f32 %v333_v36, %v257_v40 }
 0x101   :  { %v426_v42 = vpop.f32.mrf.mxu1  ;;  %v259_v43 = vpop.f32.mrf.mxu0 }
 0x102   :  { %353 = vst [vmem:[#allocation8 + $0x10] sm:$0xff] %v347_v39  ;;  %351 = vst [vmem:[#allocation8] sm:$0xff] %v345_v41  ;;  %v346_v44 = vadd.f32 %v337_v38, %v259_v43 }
 0x103   :  { %v303_v45 = vpop.f32.mrf.mxu1  ;;  %v261_v47 = vpop.f32.mrf.mxu0 }
 0x104   :  { %v350_v46 = vadd.f32 %v341_v35, %v303_v45  ;;  %352 = vst [vmem:[#allocation8 + $0x8] sm:$0xff] %v346_v44  ;;  %v348_v48 = vadd.f32 %v333_v36, %v261_v47 }
 0x105   :  { %v427_v49 = vpop.f32.mrf.mxu1  ;;  %v263_v50 = vpop.f32.mrf.mxu0 }
 0x106   :  { %356 = vst [vmem:[#allocation8 + $0x28] sm:$0xff] %v350_v46  ;;  %354 = vst [vmem:[#allocation8 + $0x18] sm:$0xff] %v348_v48  ;;  %v349_v51 = vadd.f32 %v337_v38, %v263_v50 }
 0x108   :  { %355 = vst [vmem:[#allocation8 + $0x20] sm:$0xff] %v349_v51 }
 0x109   :  { %523 = shalt.err (!%p520_p0)
}
 0x10a   :  { %s548_s28 = smov 384   ;;  %s549_s29 = smov 24  }
 0x10b   :  { %368 = dma.vmem_to_hbm [thread:$0]  %s363_s27, 768, %s585_s3, [#allocation5], %s548_s28, %s548_s28, %s549_s29  }
 0x10c   :  { %536 = dma.done.wait [#allocation5], 768  }
 0x10d   :  { %537 = vsyncadd [#allocation5], 4294966528 }
 0x10e   :  { %372 = vsyncpa [#allocation4], 1 }
 0x10f   :  { %373 = vsyncpa [#allocation7], 1 }
 0x110   :  { %374 = vsyncpa [#allocation5], 1 }

</bundles_post_ra>
